<compile_context>
chip_gen: v7x
topology: tpu7x:2x2x1
jax: 0.10.0
libtpu: 0.0.40
codegen_flags: <defaults>
</compile_context>

<pallas_src>
import functools

import jax
import jax.numpy as jnp
from jax.experimental import pallas as pl
from jax.experimental.pallas import tpu as pltpu


def _round_up(x, m):
    return ((x + m - 1) // m) * m


def _cdiv(a, b):
    return (a + b - 1) // b


_VMEM_CAP = None


def _vmem_capacity_bytes():
    """Physical VMEM per core (128 MiB v5e/v6e, 64 MiB v7x); conservative fallback."""
    global _VMEM_CAP
    if _VMEM_CAP is None:
        cap = None
        try:
            cap = int(getattr(pltpu.get_tpu_info(), "vmem_capacity_bytes", 0)) or None
        except Exception:
            cap = None
        _VMEM_CAP = cap if cap else 64 * 1024 * 1024
    return _VMEM_CAP


def mlp_kernel(x_ref, w1_ref, b1_ref, w2_ref, b2_ref, o_ref):
    # Linear 1 on the MXU: bf16 operands, f32 accumulation.
    x = x_ref[...].astype(w1_ref.dtype)
    h = jnp.dot(x, w1_ref[...], preferred_element_type=jnp.float32)
    # Bias + ReLU in f32 (cheap VPU work, hides under the MXU; v5e has no bf16 VALU).
    h = jnp.maximum(h + b1_ref[...], 0.0)
    # TODO(synk): Dropout(p=0.3) is identity in eval mode; training-mode masking omitted.
    # Linear 2 on the 128-lane-padded class dimension -> lane-dense unmasked stores.
    out = jnp.dot(h.astype(w2_ref.dtype), w2_ref[...], preferred_element_type=jnp.float32)
    o_ref[...] = (out + b2_ref[...]).astype(o_ref.dtype)


def prepare_params(w1, b1, w2, b2, *, lane=128, weight_dtype=jnp.bfloat16):
    """One-time (model-load) preprocessing, hoisted out of the per-call path:
      * zero-pad input / hidden / class dims to multiples of 128 lanes,
      * cast matmul weights to bf16 (native MXU dtype), keep biases f32.
    w1: (D, H); b1: (H,) or (1, H); w2: (H, C); b2: (C,) or (1, C)."""
    D, H = w1.shape
    C = w2.shape[1]
    Dp, Hp, Cp = _round_up(D, lane), _round_up(H, lane), _round_up(C, lane)
    b1 = jnp.reshape(b1, (1, H))
    b2 = jnp.reshape(b2, (1, C))
    w1p = jnp.zeros((Dp, Hp), weight_dtype).at[:D, :H].set(w1.astype(weight_dtype))
    b1p = jnp.zeros((1, Hp), jnp.float32).at[:, :H].set(b1.astype(jnp.float32))
    w2p = jnp.zeros((Hp, Cp), weight_dtype).at[:H, :C].set(w2.astype(weight_dtype))
    b2p = jnp.zeros((1, Cp), jnp.float32).at[:, :C].set(b2.astype(jnp.float32))
    return (w1p, b1p, w2p, b2p), C


def _plan(B, Dp, Hp, Cp, x_itemsize, out_itemsize):
    """Pick batch tile, padded batch, and vmem limit (generation-aware)."""
    vmem_cap = _vmem_capacity_bytes()
    limit_cap = min(int(0.75 * vmem_cap), 100 * 1024 * 1024)   # ~48 MiB v7x, ~96-100 MiB v5e/v6e
    tm_cap = 1024 if vmem_cap >= 96 * 1024 * 1024 else 512

    def working_set(tm):
        w_itm = 2  # bf16 weights, single-buffered (pl.Buffered(1))
        return (2 * tm * Dp * x_itemsize          # x tiles (double-buffered)
                + 2 * tm * Cp * out_itemsize       # out tiles (double-buffered)
                + Dp * Hp * w_itm + Hp * 4         # resident w1 (bf16) + b1 (f32)
                + Hp * Cp * w_itm + Cp * 4         # resident w2 (bf16) + b2 (f32)
                + tm * Hp * 4 + tm * Cp * 4)       # f32 hidden / pre-store activations

    # Guarantee >= 2 grid steps when the batch allows it (pipelining + v7x dual-TC),
    # and keep padding waste to <= one 8-row slack.
    n_tiles = _cdiv(B, tm_cap)
    if B >= 16:
        n_tiles = max(n_tiles, 2)
    tm_eff = _round_up(_cdiv(B, n_tiles), 8)
    # Shrink the tile until the working set fits the per-generation budget.
    while tm_eff > 8 and working_set(tm_eff) > int(0.8 * limit_cap):
        tm_eff = _round_up(max(tm_eff // 2, 8), 8)
    # TODO(synk): if resident weights alone exceed the budget (huge D*H), add a D-contraction
    # grid axis ("arbitrary") with an f32 VMEM accumulator instead of keeping all of w1 resident.
    Bp = _round_up(B, tm_eff)
    vmem_limit = int(min(limit_cap, max(16 * 1024 * 1024, 2 * working_set(tm_eff))))
    return tm_eff, Bp, vmem_limit


@functools.partial(jax.jit, static_argnames=("tm_eff", "Bp", "vmem_limit", "n_classes"))
def _mlp_call(x, w1p, b1p, w2p, b2p, *, tm_eff, Bp, vmem_limit, n_classes):
    B, D = x.shape
    Dp, Hp = w1p.shape
    Cp = w2p.shape[1]

    xp = x
    if D != Dp or B != Bp:
        xp = jnp.zeros((Bp, Dp), x.dtype).at[:B, :D].set(x)

    grid = (Bp // tm_eff,)
    out_padded = pl.pallas_call(
        mlp_kernel,
        out_shape=jax.ShapeDtypeStruct((Bp, Cp), jnp.float32),
        grid=grid,
        in_specs=[
            pl.BlockSpec((tm_eff, Dp), lambda i: (i, 0)),        # x tile marches over batch
            # Constant-index weights/biases: VMEM-resident, single-buffered.
            pl.BlockSpec((Dp, Hp), lambda i: (0, 0), pipeline_mode=pl.Buffered(1)),
            pl.BlockSpec((1, Hp), lambda i: (0, 0), pipeline_mode=pl.Buffered(1)),
            pl.BlockSpec((Hp, Cp), lambda i: (0, 0), pipeline_mode=pl.Buffered(1)),
            pl.BlockSpec((1, Cp), lambda i: (0, 0), pipeline_mode=pl.Buffered(1)),
        ],
        out_specs=pl.BlockSpec((tm_eff, Cp), lambda i: (i, 0)),
        compiler_params=pltpu.CompilerParams(
            dimension_semantics=("parallel",),   # batch axis shards across TCs on v7x
            vmem_limit_bytes=vmem_limit,
        ),
    )(xp, w1p, b1p, w2p, b2p)

    # Drop zero-padded classes / batch rows outside the kernel.
    return out_padded[:B, :n_classes]


def mlp_classifier(x, prepared_params, n_classes):
    w1p, b1p, w2p, b2p = prepared_params
    B = x.shape[0]
    Dp, Hp = w1p.shape
    Cp = w2p.shape[1]
    tm_eff, Bp, vmem_limit = _plan(B, Dp, Hp, Cp, jnp.dtype(x.dtype).itemsize, 4)
    return _mlp_call(x, w1p, b1p, w2p, b2p,
                     tm_eff=tm_eff, Bp=Bp, vmem_limit=vmem_limit, n_classes=n_classes)


def init_params(key, input_dim, hidden_dim, n_classes=2):
    """Deterministic init mimicking torch.nn.Linear default (uniform +/- 1/sqrt(fan_in))."""
    k1, k2, k3, k4 = jax.random.split(key, 4)
    bound1 = 1.0 / jnp.sqrt(input_dim)
    bound2 = 1.0 / jnp.sqrt(hidden_dim)
    w1 = jax.random.uniform(k1, (input_dim, hidden_dim), jnp.float32, -bound1, bound1)
    b1 = jax.random.uniform(k2, (1, hidden_dim), jnp.float32, -bound1, bound1)
    w2 = jax.random.uniform(k3, (hidden_dim, n_classes), jnp.float32, -bound2, bound2)
    b2 = jax.random.uniform(k4, (1, n_classes), jnp.float32, -bound2, bound2)
    return w1, b1, w2, b2


def _ref_bf16_path(x, w1, b1, w2, b2):
    """Reference following the kernel's dtype path (bf16 operands, f32 accumulate)."""
    bf = jnp.bfloat16
    h = jnp.dot(x.astype(bf), w1.astype(bf), preferred_element_type=jnp.float32) + b1
    h = jnp.maximum(h, 0.0)
    return jnp.dot(h.astype(bf), w2.astype(bf), preferred_element_type=jnp.float32) + b2


if __name__ == "__main__":
    key = jax.random.PRNGKey(0)

    # Small demo shape consistent with the module (eval-mode forward).
    batch, input_dim, hidden_dim = 8, 32, 32
    kx, kp = jax.random.split(key)
    x = jax.random.normal(kx, (batch, input_dim), jnp.float32)
    w1, b1, w2, b2 = init_params(kp, input_dim, hidden_dim)
    params, n_classes = prepare_params(w1, b1, w2, b2)   # one-time model-load prep

    out = mlp_classifier(x, params, n_classes)
    jax.block_until_ready(out)
    assert out.shape == (batch, 2)
    ref_bf = _ref_bf16_path(x, w1, b1, w2, b2)
    ref_f32 = jnp.maximum(x @ w1 + b1, 0.0) @ w2 + b2
    assert jnp.allclose(out, ref_bf, atol=2e-2, rtol=2e-2)
    assert jnp.allclose(out, ref_f32, atol=1e-1, rtol=1e-1)   # bf16-matmul semantics vs f32 module

    # Second check: unaligned dims (D=48, H=64) and batch padding / 2 grid steps.
    batch2, input_dim2, hidden_dim2 = 200, 48, 64
    kx2, kp2 = jax.random.split(jax.random.PRNGKey(1))
    x2 = jax.random.normal(kx2, (batch2, input_dim2), jnp.float32)
    w1b, b1b, w2b, b2b = init_params(kp2, input_dim2, hidden_dim2)
    params2, n_classes2 = prepare_params(w1b, b1b, w2b, b2b)
    out2 = mlp_classifier(x2, params2, n_classes2)
    jax.block_until_ready(out2)
    assert out2.shape == (batch2, 2)
    ref2_bf = _ref_bf16_path(x2, w1b, b1b, w2b, b2b)
    assert jnp.allclose(out2, ref2_bf, atol=2e-2, rtol=2e-2)

    print("KERNEL_OK")
</pallas_src>

<mosaic_0001>
module attributes {stable_mosaic.version = 11 : i64} {
  func.func @mlp_kernel(%arg0: i32, %arg1: memref<8x128xf32, #tpu.memory_space<vmem>>, %arg2: memref<128x128xbf16, #tpu.memory_space<vmem>>, %arg3: memref<1x128xf32, #tpu.memory_space<vmem>>, %arg4: memref<128x128xbf16, #tpu.memory_space<vmem>>, %arg5: memref<1x128xf32, #tpu.memory_space<vmem>>, %arg6: memref<8x128xf32, #tpu.memory_space<vmem>>) attributes {dimension_semantics = [#tpu.dimension_semantics<parallel>], iteration_bounds = array<i64: 1>, scalar_prefetch = 0 : i64, scratch_operands = 0 : i64, tpu.core_type = #tpu.core_type<tc>, window_params = [{transform_indices = @transform_0, window_bounds = array<i64: 8, 128>}, {pipeline_mode = #tpu.pipeline_mode<synchronous>, transform_indices = @transform_1, window_bounds = array<i64: 128, 128>}, {pipeline_mode = #tpu.pipeline_mode<synchronous>, transform_indices = @transform_2, window_bounds = array<i64: 1, 128>}, {pipeline_mode = #tpu.pipeline_mode<synchronous>, transform_indices = @transform_3, window_bounds = array<i64: 128, 128>}, {pipeline_mode = #tpu.pipeline_mode<synchronous>, transform_indices = @transform_4, window_bounds = array<i64: 1, 128>}, {transform_indices = @transform_5, window_bounds = array<i64: 8, 128>}]} {
    %c0 = arith.constant 0 : index
    %c0_0 = arith.constant 0 : index
    %0 = vector.load %arg1[%c0, %c0_0] : memref<8x128xf32, #tpu.memory_space<vmem>>, vector<8x128xf32>
    %1 = arith.truncf %0 : vector<8x128xf32> to vector<8x128xbf16>
    %c0_1 = arith.constant 0 : index
    %c0_2 = arith.constant 0 : index
    %2 = vector.load %arg2[%c0_1, %c0_2] : memref<128x128xbf16, #tpu.memory_space<vmem>>, vector<128x128xbf16>
    %cst = arith.constant dense<0.000000e+00> : vector<8x128xf32>
    %3 = tpu.matmul %1, %2, %cst {dimension_numbers = #tpu.dot_dimension_numbers<[1], [0], [0], [1], [0, 0, 1, 1], [], []>} : vector<8x128xbf16>, vector<128x128xbf16>, vector<8x128xf32> -> vector<8x128xf32>
    %c0_3 = arith.constant 0 : index
    %c0_4 = arith.constant 0 : index
    %4 = vector.load %arg3[%c0_3, %c0_4] : memref<1x128xf32, #tpu.memory_space<vmem>>, vector<1x128xf32>
    %5 = vector.broadcast %4 : vector<1x128xf32> to vector<8x128xf32>
    %6 = arith.addf %3, %5 : vector<8x128xf32>
    %cst_5 = arith.constant 0.000000e+00 : f32
    %7 = vector.broadcast %cst_5 : f32 to vector<8x128xf32>
    %8 = arith.maximumf %6, %7 : vector<8x128xf32>
    %9 = arith.truncf %8 : vector<8x128xf32> to vector<8x128xbf16>
    %c0_6 = arith.constant 0 : index
    %c0_7 = arith.constant 0 : index
    %10 = vector.load %arg4[%c0_6, %c0_7] : memref<128x128xbf16, #tpu.memory_space<vmem>>, vector<128x128xbf16>
    %cst_8 = arith.constant dense<0.000000e+00> : vector<8x128xf32>
    %11 = tpu.matmul %9, %10, %cst_8 {dimension_numbers = #tpu.dot_dimension_numbers<[1], [0], [0], [1], [0, 0, 1, 1], [], []>} : vector<8x128xbf16>, vector<128x128xbf16>, vector<8x128xf32> -> vector<8x128xf32>
    %c0_9 = arith.constant 0 : index
    %c0_10 = arith.constant 0 : index
    %12 = vector.load %arg5[%c0_9, %c0_10] : memref<1x128xf32, #tpu.memory_space<vmem>>, vector<1x128xf32>
    %13 = vector.broadcast %12 : vector<1x128xf32> to vector<8x128xf32>
    %14 = arith.addf %11, %13 : vector<8x128xf32>
    %c0_11 = arith.constant 0 : index
    %c0_12 = arith.constant 0 : index
    %15 = vector.load %arg6[%c0_11, %c0_12] : memref<8x128xf32, #tpu.memory_space<vmem>>, vector<8x128xf32>
    tpu.vector_store %arg6[%c0_11, %c0_12], %14 {strides = array<i32>} : memref<8x128xf32, #tpu.memory_space<vmem>>, vector<8x128xf32>,
    return
  }
  func.func @transform_0(%arg0: i32) -> (i32, i32) {
    %c0_i32 = arith.constant 0 : i32
    %c0_i32_0 = arith.constant 0 : i32
    return %arg0, %c0_i32 : i32, i32
  }
  func.func @transform_1(%arg0: i32) -> (i32, i32) {
    %c0_i32 = arith.constant 0 : i32
    %c0_i32_0 = arith.constant 0 : i32
    %c0_i32_1 = arith.constant 0 : i32
    return %c0_i32, %c0_i32_0 : i32, i32
  }
  func.func @transform_2(%arg0: i32) -> (i32, i32) {
    %c0_i32 = arith.constant 0 : i32
    %c0_i32_0 = arith.constant 0 : i32
    %c0_i32_1 = arith.constant 0 : i32
    return %c0_i32, %c0_i32_0 : i32, i32
  }
  func.func @transform_3(%arg0: i32) -> (i32, i32) {
    %c0_i32 = arith.constant 0 : i32
    %c0_i32_0 = arith.constant 0 : i32
    %c0_i32_1 = arith.constant 0 : i32
    return %c0_i32, %c0_i32_0 : i32, i32
  }
  func.func @transform_4(%arg0: i32) -> (i32, i32) {
    %c0_i32 = arith.constant 0 : i32
    %c0_i32_0 = arith.constant 0 : i32
    %c0_i32_1 = arith.constant 0 : i32
    return %c0_i32, %c0_i32_0 : i32, i32
  }
  func.func @transform_5(%arg0: i32) -> (i32, i32) {
    %c0_i32 = arith.constant 0 : i32
    %c0_i32_0 = arith.constant 0 : i32
    return %arg0, %c0_i32 : i32, i32
  }
}

</mosaic_0001>

<bundles_post_ra>
// kernel: _mlp_call.1
= control target key start
LH: loop header
LB: loop body
LE: loop exit
PB: predicated region body
PF: predicated region fallthrough
CT: control target
= control target key end

     0   :  { %10 = vsyncpa [#allocation3], 0  ;;  %s500_s0 = inlined_call_operand.vmem [shape: f32[8,128], index: 0, kind: input, shape index: {}]   ;;  %s501_s1 = inlined_call_operand.hbm [shape: bf16[128,128], index: 1, kind: input, shape index: {}]   ;;  %s502_s2 = inlined_call_operand.vmem [shape: f32[1,128], index: 2, kind: input, shape index: {}]   ;;  %s503_s3 = inlined_call_operand.hbm [shape: bf16[128,128], index: 3, kind: input, shape index: {}]   ;;  %s504_s4 = inlined_call_operand.vmem [shape: f32[1,128], index: 4, kind: input, shape index: {}]   ;;  %s505_s5 = inlined_call_operand.vmem [shape: f32[8,128], index: 5, kind: output, shape index: {}]  }
   0x1   :  { %11 = vsyncpa [#allocation5], 0  ;;  %s428_s18 = smov [#allocation2]   ;;  %s380_s22 = scalar_lea.hbm %s501_s1, 1024 }
   0x2   :  { %s19_s19 = sshll.u32 %s428_s18, 4  ;;  %p381_p0 = scmp.ne.s32.totalorder %s501_s1, %s380_s22  ;;  %s20_s19 = int_to_ptr.vmem [resolvable:$true] %s19_s19 }
   0x3   :  { %p384_p1 = scmp.lt.u32.totalorder %s380_s22, %s501_s1 }
   0x5   :  { %p386_p2 = pnand %p384_p1, %p381_p0 }
   0x7   :  { %389 = shalt.err (!%p386_p2)
}
   0x8   :  { %s390_s27 = scalar_lea.vmem %s20_s19, 1024  ;;  %p395_p4 = scmp.lt.s32.totalorder %s20_s19, %s20_s19 }
   0x9   :  { %p391_p3 = scmp.ne.s32.totalorder %s20_s19, %s390_s27  ;;  %p396_p5 = scmp.lt.s32.totalorder %s390_s27, %s390_s27 }
   0xb   :  { %p397_p6 = por %p396_p5, %p395_p4 }
   0xd   :  { %p398_p7 = pnand %p397_p6, %p391_p3 }
   0xf   :  { %401 = shalt.err (!%p398_p7)
}
  0x10   :  { %s429_s28 = smov 64   ;;  %s430_s29 = smov 4  }
  0x11   :  { %25 = dma.hbm_to_vmem [thread:$0]  %s501_s1, 1024, %s20_s19, [#allocation3], %s429_s28, %s429_s28, %s430_s29  }
  0x12   :  { %s431_s7 = smov [#allocation4]   ;;  %s402_s11 = scalar_lea.hbm %s503_s3, 1024 }
  0x13   :  { %s33_s8 = sshll.u32 %s431_s7, 4  ;;  %p403_p8 = scmp.ne.s32.totalorder %s503_s3, %s402_s11  ;;  %s34_s8 = int_to_ptr.vmem [resolvable:$true] %s33_s8 }
  0x14   :  { %p406_p9 = scmp.lt.u32.totalorder %s402_s11, %s503_s3 }
  0x16   :  { %p408_p10 = pnand %p406_p9, %p403_p8 }
  0x18   :  { %411 = shalt.err (!%p408_p10)
}
  0x19   :  { %s412_s16 = scalar_lea.vmem %s34_s8, 1024  ;;  %p417_p12 = scmp.lt.s32.totalorder %s34_s8, %s34_s8 }
  0x1a   :  { %p413_p11 = scmp.ne.s32.totalorder %s34_s8, %s412_s16  ;;  %p418_p13 = scmp.lt.s32.totalorder %s412_s16, %s412_s16 }
  0x1c   :  { %p419_p0 = por %p418_p13, %p417_p12 }
  0x1e   :  { %p420_p1 = pnand %p419_p0, %p413_p11 }
  0x20   :  { %423 = shalt.err (!%p420_p1)
}
  0x21   :  { %39 = dma.hbm_to_vmem [thread:$0]  %s503_s3, 1024, %s34_s8, [#allocation5], %s429_s28, %s429_s28, %s430_s29  }
  0x22   :  { %424 = dma.done.wait [#allocation3], 1024  }
  0x23   :  { %425 = vsyncadd [#allocation3], 4294966272 }
  0x24   :  { %426 = dma.done.wait [#allocation5], 1024  }
  0x25   :  { %427 = vsyncadd [#allocation5], 4294966272  ;;  %v432_v0 = vmov 0.0   ;;  %vm433_vm0 = vmmov 0   ;;  %v364_v1 = vld [vmem:[#allocation2] sm:$0xff]   ;;  %v365_v2 = vld [vmem:[#allocation2 + $0x8] sm:$0xff]  }
  0x26   :  { %318 = vmatprep.subr.bf16.mxu0 %v432_v0  ;;  %334 = vmatprep.mubr.msk.bf16.mxu0 %vm433_vm0, %v432_v0  ;;  %v366_v3 = vld [vmem:[#allocation2 + $0x10] sm:$0xff]   ;;  %v372_v4 = vld [vmem:[#allocation4] sm:$0xff]   ;;  %v367_v5 = vld [vmem:[#allocation2 + $0x18] sm:$0xff]  }
  0x27   :  { %338 = vmatprep.subr.bf16.mxu1 %v432_v0  ;;  %354 = vmatprep.mubr.msk.bf16.mxu1 %vm433_vm0, %v432_v0  ;;  %v373_v6 = vld [vmem:[#allocation4 + $0x8] sm:$0xff]   ;;  %v368_v7 = vld [vmem:[#allocation2 + $0x20] sm:$0xff]   ;;  %v374_v8 = vld [vmem:[#allocation4 + $0x10] sm:$0xff]  }
  0x28   :  { %319 = vmatpush3.bf16.msra.mxu0 %v364_v1  ;;  %339 = vmatpush3.bf16.msra.mxu1 %v372_v4  ;;  %v369_v9 = vld [vmem:[#allocation2 + $0x28] sm:$0xff]   ;;  %v375_v10 = vld [vmem:[#allocation4 + $0x18] sm:$0xff]   ;;  %v370_v11 = vld [vmem:[#allocation2 + $0x30] sm:$0xff]  }
  0x29   :  { %320 = vmatprep.subr.bf16.mxu0 %v432_v0  ;;  %340 = vmatprep.subr.bf16.mxu1 %v432_v0  ;;  %v376_v12 = vld [vmem:[#allocation4 + $0x20] sm:$0xff]   ;;  %v371_v13 = vld [vmem:[#allocation2 + $0x38] sm:$0xff]   ;;  %v377_v15 = vld [vmem:[#allocation4 + $0x28] sm:$0xff]  }
  0x2a   :  { %v49_v14 = vld [vmem:[%s500_s0] sm:$0xff]  ;;  %v378_v17 = vld [vmem:[#allocation4 + $0x30] sm:$0xff]   ;;  %v379_v18 = vld [vmem:[#allocation4 + $0x38] sm:$0xff]  }
  0x2b   :  { %v50_v16 = vpack.c.bf16 %v49_v14, %v49_v14  ;;  %v282_v19 = vld [vmem:[%s502_s2] ss:$0 sm:$0xff] }
  0x2c   :  { %321 = vmatpush3.bf16.msra.mxu0 %v365_v2  ;;  %341 = vmatpush3.bf16.msra.mxu1 %v373_v6  ;;  %v291_v27 = vld [vmem:[%s504_s4] ss:$0 sm:$0xff] }
  0x2d   :  { %322 = vmatprep.subr.bf16.mxu0 %v432_v0  ;;  %342 = vmatprep.subr.bf16.mxu1 %v432_v0 }
  0x30   :  { %323 = vmatpush3.bf16.msra.mxu0 %v366_v3  ;;  %343 = vmatpush3.bf16.msra.mxu1 %v374_v8 }
  0x31   :  { %324 = vmatprep.subr.bf16.mxu0 %v432_v0  ;;  %344 = vmatprep.subr.bf16.mxu1 %v432_v0 }
  0x34   :  { %325 = vmatpush3.bf16.msra.mxu0 %v367_v5  ;;  %345 = vmatpush3.bf16.msra.mxu1 %v375_v10 }
  0x35   :  { %326 = vmatprep.subr.bf16.mxu0 %v432_v0  ;;  %346 = vmatprep.subr.bf16.mxu1 %v432_v0 }
  0x38   :  { %327 = vmatpush3.bf16.msra.mxu0 %v368_v7  ;;  %347 = vmatpush3.bf16.msra.mxu1 %v376_v12 }
  0x39   :  { %328 = vmatprep.subr.bf16.mxu0 %v432_v0  ;;  %348 = vmatprep.subr.bf16.mxu1 %v432_v0 }
  0x3c   :  { %329 = vmatpush3.bf16.msra.mxu0 %v369_v9  ;;  %349 = vmatpush3.bf16.msra.mxu1 %v377_v15 }
  0x3d   :  { %330 = vmatprep.subr.bf16.mxu0 %v432_v0  ;;  %350 = vmatprep.subr.bf16.mxu1 %v432_v0 }
  0x40   :  { %331 = vmatpush3.bf16.msra.mxu0 %v370_v11  ;;  %351 = vmatpush3.bf16.msra.mxu1 %v378_v17 }
  0x41   :  { %332 = vmatprep.subr.bf16.mxu0 %v432_v0  ;;  %352 = vmatprep.subr.bf16.mxu1 %v432_v0 }
  0x44   :  { %333 = vmatpush3.bf16.msra.mxu0 %v371_v13  ;;  %353 = vmatpush3.bf16.msra.mxu1 %v379_v18 }
  0x47   :  { %335 = vmatmul.mubr.bf16.vlgmr.msra.gmra.mrb[0].mxu0 %v50_v16 }
 0x11a   :  { %v156_v20 = vpop.f32.mrb[0].mxu0 }
 0x11b   :  { %v157_v21 = vadd.f32 %v282_v19, %v156_v20  ;;  %v336_v22 = vpop.f32.mrb[1].mxu0 }
 0x11c   :  { %v159_v23 = vpop.f32.mrb[2].mxu0 }
 0x11d   :  { %v162_v24 = vmax.f32 %v157_v21, 0.0  ;;  %v337_v25 = vpop.f32.mrb[3].mxu0 }
 0x11f   :  { %v163_v26 = vpack.c.bf16 %v162_v24, %v162_v24 }
 0x121   :  { %355 = vmatmul.mubr.bf16.vlgmr.msra.gmra.mrb[0].mxu1 %v163_v26 }
 0x1f4   :  { %v269_v28 = vpop.f32.mrb[0].mxu1 }
 0x1f5   :  { %v270_v29 = vadd.f32 %v291_v27, %v269_v28  ;;  %v356_v30 = vpop.f32.mrb[1].mxu1 }
 0x1f6   :  { %v272_v31 = vpop.f32.mrb[2].mxu1 }
 0x1f7   :  { %275 = vst [vmem:[%s505_s5] sm:$0xff] %v270_v29  ;;  %v357_v32 = vpop.f32.mrb[3].mxu1 }
 0x1f8   :  { %280 = vsyncpa [#allocation3], 1 }
 0x1f9   :  { %281 = vsyncpa [#allocation5], 1 }

</bundles_post_ra>
